<compile_context>
chip_gen: v6e
topology: v6e:2x2x1
jax: 0.10.0
libtpu: 0.0.40
codegen_flags: <defaults>
</compile_context>

<pallas_src>
import jax
import jax.numpy as jnp
from jax.experimental import pallas as pl
from jax.experimental.pallas import tpu as pltpu

HIDDEN = 256
TB_MAX = 2048        # max batch tile
MIN_SPLIT_B = 256    # above this batch, force >= 2 tiles (feeds both v7x TCs)
VMEM_LIMIT = 32 * 1024 * 1024


def _round_up(n, m):
    return (n + m - 1) // m * m


def _pick_batch_tile(b):
    """Static (trace-time) batch tile choice -> (TB, Bp).

    Prefers a multiple-of-8 tile that divides the 8-aligned batch (so no
    trace-time jnp.pad of the activations); pads to a TB multiple only as a
    ragged-batch fallback.  Caps the tile at ceil(B/2) for B > MIN_SPLIT_B so
    the 'parallel' grid axis has at least two steps (both v7x TensorCores)."""
    b8 = _round_up(b, 8)
    cap = TB_MAX
    if b > MIN_SPLIT_B:
        cap = min(TB_MAX, _round_up(-(-b8 // 2), 8))
    best = 8
    d = 8
    while d <= min(b8, cap):
        if b8 % d == 0:
            best = d
        d += 8
    if best * 4 >= min(b8, cap):      # good divisor found: pad at most 7 rows
        return best, b8
    tb = min(cap, b8)                 # no usable divisor: pad to a TB multiple
    return tb, _round_up(b, tb)


def _soft_q_kernel(x_ref, a_ref, w1x_ref, w1a_ref, b1_ref, w2_ref, b2_ref,
                   w3_ref, b3_ref, out_ref):
    # fc1: h1 = x @ w1_x + a @ w1_a + b1  (== concat([x, a], 1) @ w1 + b1), ReLU
    h1 = jnp.dot(x_ref[...].astype(jnp.bfloat16), w1x_ref[...],
                 preferred_element_type=jnp.float32)
    h1 = h1 + jnp.dot(a_ref[...].astype(jnp.bfloat16), w1a_ref[...],
                      preferred_element_type=jnp.float32)
    h1 = jnp.maximum(h1 + b1_ref[...], 0.0)                  # f32 elementwise
    # fc2 + ReLU
    h2 = jnp.dot(h1.astype(jnp.bfloat16), w2_ref[...],
                 preferred_element_type=jnp.float32)
    h2 = jnp.maximum(h2 + b2_ref[...], 0.0)                  # f32 elementwise
    # fc3 (256 -> 1) as a VPU/XLU reduction against the (1, 256) weight row:
    # no MXU pass, no padded weight, (TB, 1) output tile.
    out_ref[...] = (jnp.sum(h2 * w3_ref[...], axis=-1, keepdims=True)
                    + b3_ref[...])


@jax.jit
def soft_q_forward(x, a, kparams):
    """x: [B, obs_dim], a: [B, act_dim] -> q: [B, 1] float32."""
    w1x, w1a, b1, w2, b2, w3r, b3r = kparams
    B, obs_dim = x.shape
    act_dim = a.shape[1]

    TB, Bp = _pick_batch_tile(B)                 # static (trace-time) choice
    if Bp != B:
        x = jnp.pad(x, ((0, Bp - B), (0, 0)))
        a = jnp.pad(a, ((0, Bp - B), (0, 0)))
    num_tiles = Bp // TB

    d_in = obs_dim + act_dim
    flops = 2 * Bp * (d_in * HIDDEN + HIDDEN * HIDDEN + HIDDEN)

    def _nbytes(v):
        return v.size * v.dtype.itemsize

    bytes_accessed = (_nbytes(x) + _nbytes(a) + Bp * 4 +
                      sum(_nbytes(p) for p in (w1x, w1a, b1, w2, b2, w3r, b3r)))

    out = pl.pallas_call(
        _soft_q_kernel,
        out_shape=jax.ShapeDtypeStruct((Bp, 1), jnp.float32),
        grid_spec=pltpu.PrefetchScalarGridSpec(
            num_scalar_prefetch=0,
            grid=(num_tiles,),
            in_specs=[
                pl.BlockSpec((TB, obs_dim), lambda i: (i, 0)),      # x tile
                pl.BlockSpec((TB, act_dim), lambda i: (i, 0)),      # a tile
                pl.BlockSpec((obs_dim, HIDDEN), lambda i: (0, 0)),  # w1_x bf16
                pl.BlockSpec((act_dim, HIDDEN), lambda i: (0, 0)),  # w1_a bf16
                pl.BlockSpec((1, HIDDEN), lambda i: (0, 0)),        # b1   f32
                pl.BlockSpec((HIDDEN, HIDDEN), lambda i: (0, 0)),   # w2   bf16
                pl.BlockSpec((1, HIDDEN), lambda i: (0, 0)),        # b2   f32
                pl.BlockSpec((1, HIDDEN), lambda i: (0, 0)),        # w3 row f32
                pl.BlockSpec((1, 1), lambda i: (0, 0)),             # b3   f32
            ],
            out_specs=pl.BlockSpec((TB, 1), lambda i: (i, 0)),
        ),
        compiler_params=pltpu.CompilerParams(
            dimension_semantics=("parallel",),
            vmem_limit_bytes=VMEM_LIMIT),
        cost_estimate=pl.CostEstimate(flops=flops, transcendentals=0,
                                      bytes_accessed=bytes_accessed),
    )(x, a, w1x, w1a, b1, w2, b2, w3r, b3r)
    return out[:B]                               # [B, 1]


def init_params(key, obs_dim, act_dim):
    """Deterministic init matching torch.nn.Linear default U(-1/sqrt(fan_in), +).

    Weights are stored transposed relative to torch: W has shape [in, out]."""
    d_in = obs_dim + act_dim
    ks = jax.random.split(key, 6)

    def linear(kw, kb, fan_in, fan_out):
        bound = 1.0 / jnp.sqrt(jnp.float32(fan_in))
        w = jax.random.uniform(kw, (fan_in, fan_out), jnp.float32, -bound, bound)
        b = jax.random.uniform(kb, (1, fan_out), jnp.float32, -bound, bound)
        return w, b

    w1, b1 = linear(ks[0], ks[1], d_in, HIDDEN)
    w2, b2 = linear(ks[2], ks[3], HIDDEN, HIDDEN)
    w3, b3 = linear(ks[4], ks[5], HIDDEN, 1)
    return (w1, b1, w2, b2, w3, b3)


def prepare_params(params, obs_dim):
    """One-time conversion to kernel layout: split w1, bf16 MXU weights,
    fc3 weight as a (1, 256) f32 row for the in-kernel reduction."""
    w1, b1, w2, b2, w3, b3 = params
    w1x = w1[:obs_dim].astype(jnp.bfloat16)
    w1a = w1[obs_dim:].astype(jnp.bfloat16)
    w3r = w3.reshape(1, HIDDEN).astype(jnp.float32)   # (1, 256) row
    b3r = b3.reshape(1, 1).astype(jnp.float32)        # (1, 1)
    return (w1x, w1a, b1.astype(jnp.float32), w2.astype(jnp.bfloat16),
            b2.astype(jnp.float32), w3r, b3r)


def _reference(x, a, params):
    """Pure-JAX reference with the same numerics (bf16 MXU operands, f32 accum,
    fc3 in f32)."""
    w1, b1, w2, b2, w3, b3 = params

    def mm(h, w):
        return jnp.dot(h.astype(jnp.bfloat16), w.astype(jnp.bfloat16),
                       preferred_element_type=jnp.float32)

    h = jnp.concatenate([x, a], axis=1).astype(jnp.float32)
    h = jnp.maximum(mm(h, w1) + b1, 0.0)
    h = jnp.maximum(mm(h, w2) + b2, 0.0)
    return jnp.dot(h, w3) + b3


if __name__ == "__main__":
    key = jax.random.PRNGKey(0)
    k_obs, k_act, k_param = jax.random.split(key, 3)

    obs_dim, act_dim = 16, 8
    params = init_params(k_param, obs_dim, act_dim)
    kparams = prepare_params(params, obs_dim)

    # Small demo batch.
    batch = 2
    x = jax.random.normal(k_obs, (batch, obs_dim), jnp.float32)
    a = jax.random.normal(k_act, (batch, act_dim), jnp.float32)
    q = jax.block_until_ready(soft_q_forward(x, a, kparams))
    q_ref = _reference(x, a, params)
    assert q.shape == (batch, 1), q.shape
    assert jnp.allclose(q, q_ref, atol=2e-2, rtol=2e-2), (q, q_ref)

    # Multi-tile + ragged-tail path (exercises tile selection and padding).
    batch2 = 300
    x2 = jax.random.normal(k_obs, (batch2, obs_dim), jnp.float32)
    a2 = jax.random.normal(k_act, (batch2, act_dim), jnp.float32)
    q2 = jax.block_until_ready(soft_q_forward(x2, a2, kparams))
    q2_ref = _reference(x2, a2, params)
    assert q2.shape == (batch2, 1), q2.shape
    assert jnp.allclose(q2, q2_ref, atol=2e-2, rtol=2e-2)

    print("KERNEL_OK")
</pallas_src>

<mosaic_0001>
module attributes {stable_mosaic.version = 11 : i64} {
  func.func @_soft_q_kernel(%arg0: i32, %arg1: memref<8x16xf32, #tpu.memory_space<vmem>>, %arg2: memref<8x8xf32, #tpu.memory_space<vmem>>, %arg3: memref<16x256xbf16, #tpu.memory_space<vmem>>, %arg4: memref<8x256xbf16, #tpu.memory_space<vmem>>, %arg5: memref<1x256xf32, #tpu.memory_space<vmem>>, %arg6: memref<256x256xbf16, #tpu.memory_space<vmem>>, %arg7: memref<1x256xf32, #tpu.memory_space<vmem>>, %arg8: memref<1x256xf32, #tpu.memory_space<vmem>>, %arg9: memref<1x1xf32, #tpu.memory_space<vmem>>, %arg10: memref<8x1xf32, #tpu.memory_space<vmem>>) attributes {dimension_semantics = [#tpu.dimension_semantics<parallel>], iteration_bounds = array<i64: 1>, scalar_prefetch = 0 : i64, scratch_operands = 0 : i64, tpu.core_type = #tpu.core_type<tc>, window_params = [{transform_indices = @transform_0, window_bounds = array<i64: 8, 16>}, {transform_indices = @transform_1, window_bounds = array<i64: 8, 8>}, {pipeline_mode = #tpu.pipeline_mode<synchronous>, transform_indices = @transform_2, window_bounds = array<i64: 16, 256>}, {pipeline_mode = #tpu.pipeline_mode<synchronous>, transform_indices = @transform_3, window_bounds = array<i64: 8, 256>}, {pipeline_mode = #tpu.pipeline_mode<synchronous>, transform_indices = @transform_4, window_bounds = array<i64: 1, 256>}, {pipeline_mode = #tpu.pipeline_mode<synchronous>, transform_indices = @transform_5, window_bounds = array<i64: 256, 256>}, {pipeline_mode = #tpu.pipeline_mode<synchronous>, transform_indices = @transform_6, window_bounds = array<i64: 1, 256>}, {pipeline_mode = #tpu.pipeline_mode<synchronous>, transform_indices = @transform_7, window_bounds = array<i64: 1, 256>}, {pipeline_mode = #tpu.pipeline_mode<synchronous>, transform_indices = @transform_8, window_bounds = array<i64: 1, 1>}, {transform_indices = @transform_9, window_bounds = array<i64: 8, 1>}]} {
    %c0 = arith.constant 0 : index
    %c0_0 = arith.constant 0 : index
    %0 = vector.load %arg1[%c0, %c0_0] : memref<8x16xf32, #tpu.memory_space<vmem>>, vector<8x16xf32>
    %1 = arith.truncf %0 : vector<8x16xf32> to vector<8x16xbf16>
    %c0_1 = arith.constant 0 : index
    %c0_2 = arith.constant 0 : index
    %2 = vector.load %arg3[%c0_1, %c0_2] : memref<16x256xbf16, #tpu.memory_space<vmem>>, vector<16x256xbf16>
    %cst = arith.constant dense<0.000000e+00> : vector<8x256xf32>
    %3 = tpu.matmul %1, %2, %cst {dimension_numbers = #tpu.dot_dimension_numbers<[1], [0], [0], [1], [0, 0, 1, 1], [], []>} : vector<8x16xbf16>, vector<16x256xbf16>, vector<8x256xf32> -> vector<8x256xf32>
    %c0_3 = arith.constant 0 : index
    %c0_4 = arith.constant 0 : index
    %4 = vector.load %arg2[%c0_3, %c0_4] : memref<8x8xf32, #tpu.memory_space<vmem>>, vector<8x8xf32>
    %5 = arith.truncf %4 : vector<8x8xf32> to vector<8x8xbf16>
    %c0_5 = arith.constant 0 : index
    %c0_6 = arith.constant 0 : index
    %6 = vector.load %arg4[%c0_5, %c0_6] : memref<8x256xbf16, #tpu.memory_space<vmem>>, vector<8x256xbf16>
    %cst_7 = arith.constant dense<0.000000e+00> : vector<8x256xf32>
    %7 = tpu.matmul %5, %6, %cst_7 {dimension_numbers = #tpu.dot_dimension_numbers<[1], [0], [0], [1], [0, 0, 1, 1], [], []>} : vector<8x8xbf16>, vector<8x256xbf16>, vector<8x256xf32> -> vector<8x256xf32>
    %8 = arith.addf %3, %7 : vector<8x256xf32>
    %c0_8 = arith.constant 0 : index
    %c0_9 = arith.constant 0 : index
    %9 = vector.load %arg5[%c0_8, %c0_9] : memref<1x256xf32, #tpu.memory_space<vmem>>, vector<1x256xf32>
    %10 = vector.broadcast %9 : vector<1x256xf32> to vector<8x256xf32>
    %11 = arith.addf %8, %10 : vector<8x256xf32>
    %cst_10 = arith.constant 0.000000e+00 : f32
    %12 = vector.broadcast %cst_10 : f32 to vector<8x256xf32>
    %13 = arith.maximumf %11, %12 : vector<8x256xf32>
    %14 = arith.truncf %13 : vector<8x256xf32> to vector<8x256xbf16>
    %c0_11 = arith.constant 0 : index
    %c0_12 = arith.constant 0 : index
    %15 = vector.load %arg6[%c0_11, %c0_12] : memref<256x256xbf16, #tpu.memory_space<vmem>>, vector<256x256xbf16>
    %cst_13 = arith.constant dense<0.000000e+00> : vector<8x256xf32>
    %16 = tpu.matmul %14, %15, %cst_13 {dimension_numbers = #tpu.dot_dimension_numbers<[1], [0], [0], [1], [0, 0, 1, 1], [], []>} : vector<8x256xbf16>, vector<256x256xbf16>, vector<8x256xf32> -> vector<8x256xf32>
    %c0_14 = arith.constant 0 : index
    %c0_15 = arith.constant 0 : index
    %17 = vector.load %arg7[%c0_14, %c0_15] : memref<1x256xf32, #tpu.memory_space<vmem>>, vector<1x256xf32>
    %18 = vector.broadcast %17 : vector<1x256xf32> to vector<8x256xf32>
    %19 = arith.addf %16, %18 : vector<8x256xf32>
    %cst_16 = arith.constant 0.000000e+00 : f32
    %20 = vector.broadcast %cst_16 : f32 to vector<8x256xf32>
    %21 = arith.maximumf %19, %20 : vector<8x256xf32>
    %c0_17 = arith.constant 0 : index
    %c0_18 = arith.constant 0 : index
    %22 = vector.load %arg8[%c0_17, %c0_18] : memref<1x256xf32, #tpu.memory_space<vmem>>, vector<1x256xf32>
    %23 = vector.broadcast %22 : vector<1x256xf32> to vector<8x256xf32>
    %24 = arith.mulf %21, %23 : vector<8x256xf32>
    %cst_19 = arith.constant dense<0.000000e+00> : vector<8xf32>
    %25 = vector.multi_reduction <add>, %24, %cst_19 [1] : vector<8x256xf32> to vector<8xf32>
    %26 = vector.shape_cast %25 : vector<8xf32> to vector<8x1xf32>
    %c0_20 = arith.constant 0 : index
    %c0_21 = arith.constant 0 : index
    %27 = vector.load %arg9[%c0_20, %c0_21] : memref<1x1xf32, #tpu.memory_space<vmem>>, vector<1x1xf32>
    %28 = vector.broadcast %27 : vector<1x1xf32> to vector<8x1xf32>
    %29 = arith.addf %26, %28 : vector<8x1xf32>
    %c0_22 = arith.constant 0 : index
    %c0_23 = arith.constant 0 : index
    %30 = vector.load %arg10[%c0_22, %c0_23] : memref<8x1xf32, #tpu.memory_space<vmem>>, vector<8x1xf32>
    tpu.vector_store %arg10[%c0_22, %c0_23], %29 {strides = array<i32>} : memref<8x1xf32, #tpu.memory_space<vmem>>, vector<8x1xf32>,
    return
  }
  func.func @transform_0(%arg0: i32) -> (i32, i32) {
    %c0_i32 = arith.constant 0 : i32
    %c0_i32_0 = arith.constant 0 : i32
    return %arg0, %c0_i32 : i32, i32
  }
  func.func @transform_1(%arg0: i32) -> (i32, i32) {
    %c0_i32 = arith.constant 0 : i32
    %c0_i32_0 = arith.constant 0 : i32
    return %arg0, %c0_i32 : i32, i32
  }
  func.func @transform_2(%arg0: i32) -> (i32, i32) {
    %c0_i32 = arith.constant 0 : i32
    %c0_i32_0 = arith.constant 0 : i32
    %c0_i32_1 = arith.constant 0 : i32
    return %c0_i32, %c0_i32_0 : i32, i32
  }
  func.func @transform_3(%arg0: i32) -> (i32, i32) {
    %c0_i32 = arith.constant 0 : i32
    %c0_i32_0 = arith.constant 0 : i32
    %c0_i32_1 = arith.constant 0 : i32
    return %c0_i32, %c0_i32_0 : i32, i32
  }
  func.func @transform_4(%arg0: i32) -> (i32, i32) {
    %c0_i32 = arith.constant 0 : i32
    %c0_i32_0 = arith.constant 0 : i32
    %c0_i32_1 = arith.constant 0 : i32
    return %c0_i32, %c0_i32_0 : i32, i32
  }
  func.func @transform_5(%arg0: i32) -> (i32, i32) {
    %c0_i32 = arith.constant 0 : i32
    %c0_i32_0 = arith.constant 0 : i32
    %c0_i32_1 = arith.constant 0 : i32
    return %c0_i32, %c0_i32_0 : i32, i32
  }
  func.func @transform_6(%arg0: i32) -> (i32, i32) {
    %c0_i32 = arith.constant 0 : i32
    %c0_i32_0 = arith.constant 0 : i32
    %c0_i32_1 = arith.constant 0 : i32
    return %c0_i32, %c0_i32_0 : i32, i32
  }
  func.func @transform_7(%arg0: i32) -> (i32, i32) {
    %c0_i32 = arith.constant 0 : i32
    %c0_i32_0 = arith.constant 0 : i32
    %c0_i32_1 = arith.constant 0 : i32
    return %c0_i32, %c0_i32_0 : i32, i32
  }
  func.func @transform_8(%arg0: i32) -> (i32, i32) {
    %c0_i32 = arith.constant 0 : i32
    %c0_i32_0 = arith.constant 0 : i32
    %c0_i32_1 = arith.constant 0 : i32
    return %c0_i32, %c0_i32_0 : i32, i32
  }
  func.func @transform_9(%arg0: i32) -> (i32, i32) {
    %c0_i32 = arith.constant 0 : i32
    %c0_i32_0 = arith.constant 0 : i32
    return %arg0, %c0_i32 : i32, i32
  }
}

</mosaic_0001>

<bundles_post_ra>
// kernel: soft_q_forward.1
= control target key start
LH: loop header
LB: loop body
LE: loop exit
PB: predicated region body
PF: predicated region fallthrough
CT: control target
= control target key end

     0   :  { %s671_s0 = inlined_call_operand.vmem [shape: f32[8,16], index: 0, kind: input, shape index: {}]   ;;  %s672_s1 = inlined_call_operand.vmem [shape: f32[8,8], index: 1, kind: input, shape index: {}]   ;;  %s673_s2 = inlined_call_operand.vmem [shape: bf16[16,256], index: 2, kind: input, shape index: {}]   ;;  %s674_s3 = inlined_call_operand.vmem [shape: bf16[8,256], index: 3, kind: input, shape index: {}]   ;;  %s675_s4 = inlined_call_operand.vmem [shape: f32[1,256], index: 4, kind: input, shape index: {}]   ;;  %s676_s5 = inlined_call_operand.hbm [shape: bf16[256,256], index: 5, kind: input, shape index: {}]   ;;  %s677_s6 = inlined_call_operand.vmem [shape: f32[1,256], index: 6, kind: input, shape index: {}]   ;;  %s678_s7 = inlined_call_operand.vmem [shape: f32[1,256], index: 7, kind: input, shape index: {}]   ;;  %s679_s8 = inlined_call_operand.<no memory space> [shape: f32[1,1], index: 8, kind: input, shape index: {}]   ;;  %s680_s9 = inlined_call_operand.vmem [shape: f32[8,1], index: 9, kind: output, shape index: {}]  }
   0x1   :  { %v14_v0 = vstv %s679_s8 }
   0x2   :  { %15 = vst [vmem:[#allocation2] sm:$0x1] %v14_v0 }
   0x3   :  { %16 = vsyncpa [#allocation4], 0  ;;  %s584_s11 = smov [#allocation3]  }
   0x4   :  { %s32_s12 = sshll.u32 %s584_s11, 4  ;;  %s33_s12 = int_to_ptr.vmem [resolvable:$true] %s32_s12 }
   0x5   :  { %s570_s13 = scalar_lea.vmem %s33_s12, 4096  ;;  %p575_p1 = scmp.lt.s32.totalorder %s33_s12, %s33_s12 }
   0x6   :  { %p571_p0 = scmp.ne.s32.totalorder %s33_s12, %s570_s13  ;;  %p576_p2 = scmp.lt.s32.totalorder %s570_s13, %s570_s13 }
   0x8   :  { %p577_p3 = por %p576_p2, %p575_p1 }
   0xa   :  { %p578_p4 = pnand %p577_p3, %p571_p0 }
   0xc   :  { %581 = shalt.err (!%p578_p4)
}
   0xd   :  { %s585_s14 = smov 128   ;;  %s586_s15 = smov 8  }
   0xe   :  { %38 = dma.hbm_to_vmem [thread:$0]  %s676_s5, 4096, %s33_s12, [#allocation4], %s585_s14, %s585_s14, %s586_s15  }
   0xf   :  { %582 = dma.done.wait [#allocation4], 4096  }
  0x10   :  { %583 = vsyncadd [#allocation4], 4294963200  ;;  %v587_v1 = vmov 0   ;;  %v55_v2 = vld [vmem:[%s674_s3] sm:$0xff]  ;;  %vm65_vm0 = vcmask 1043456   ;;  %vm61_vm1 = vcmask 64512   ;;  %v170_v44 = vlaneseq }
  0x11   :  { %104 = vmatprep.mubr.bf16.mxu1 %v587_v1  ;;  %v53_v3 = vld [vmem:[%s672_s1] sm:$0xff]  ;;  %v466_v4 = vcombine.high %v55_v2, %v55_v2  ;;  %v465_v5 = vcombine.low %v55_v2, %v55_v2  ;;  %v516_v10 = vld [vmem:[#allocation3 + $0x70] ss:$8 sps:$4 sm:$0xff]   ;;  %vm123_vm2 = vcmask 130048   ;;  %vm458_vm3 = vcmask 7168  }
  0x12   :  { %v513_v6 = vld [vmem:[%s673_s2 + $0x4] ss:$8 sps:$4 sm:$0xff]   ;;  %v54_v8 = vpack.c.bf16 %v53_v3, %v53_v3  ;;  %v514_v9 = vld [vmem:[#allocation3 + $0x74] ss:$8 sps:$4 sm:$0xff]   ;;  %v522_v16 = vld [vmem:[#allocation3 + $0x50] ss:$8 sps:$4 sm:$0xff]  }
  0x13   :  { %467 = vmatprep.subr.msk.bf16.mxu1 %vm65_vm0, %v466_v4  ;;  %v67_v7 = vsel %vm65_vm0, %v465_v5, 0  ;;  %v511_v11 = vld [vmem:[%s673_s2] ss:$8 sps:$4 sm:$0xff]   ;;  %390 = vmatprep.subr.bf16.mxu0 %v514_v9  ;;  %v528_v21 = vld [vmem:[#allocation3 + $0x30] ss:$8 sps:$4 sm:$0xff]   ;;  %v171_v45 = vshrl.u32 %v170_v44, 7 }
  0x14   :  { %87 = vmatpush1.bf16.msra.mxu1 %v67_v7  ;;  %v517_v12 = vld [vmem:[#allocation3 + $0x64] ss:$8 sps:$4 sm:$0xff]   ;;  %391 = vmatpush1.bf16.msra.mxu0 %v516_v10  ;;  %v519_v13 = vld [vmem:[#allocation3 + $0x60] ss:$8 sps:$4 sm:$0xff]   ;;  %v520_v14 = vld [vmem:[#allocation3 + $0x54] ss:$8 sps:$4 sm:$0xff]  }
  0x15   :  { %141 = vmatprep.subr.bf16.mxu1 %v513_v6  ;;  %392 = vmatprep.subr.bf16.mxu0 %v517_v12  ;;  %v49_v15 = vld [vmem:[%s671_s0] sm:$0xff]  ;;  %v534_v25 = vld [vmem:[#allocation3 + $0x10] ss:$8 sps:$4 sm:$0xff]   ;;  %v172_v48 = vsub.s32 0, %v171_v45  ;;  %v176_v51 = vsub.s32 1, %v171_v45 }
  0x16   :  { %v50_v17 = vpack.c.bf16 %v49_v15, %v49_v15  ;;  %v523_v18 = vld [vmem:[#allocation3 + $0x44] ss:$8 sps:$4 sm:$0xff]   ;;  %v525_v19 = vld [vmem:[#allocation3 + $0x40] ss:$8 sps:$4 sm:$0xff]   ;;  %v526_v20 = vld [vmem:[#allocation3 + $0x34] ss:$8 sps:$4 sm:$0xff]  }
  0x17   :  { %468 = vmatmul.mubr.msk.bf16.vlgmr.msra.gmra.mxu1 %vm61_vm1, %v54_v8  ;;  %v529_v22 = vld [vmem:[#allocation3 + $0x24] ss:$8 sps:$4 sm:$0xff]   ;;  %v531_v23 = vld [vmem:[#allocation3 + $0x20] ss:$8 sps:$4 sm:$0xff]   ;;  %v532_v24 = vld [vmem:[#allocation3 + $0x14] ss:$8 sps:$4 sm:$0xff]  }
  0x18   :  { %142 = vmatpush1.bf16.msra.mxu1 %v511_v11  ;;  %159 = vmatprep.mubr.bf16.mxu1 %v587_v1  ;;  %v535_v26 = vld [vmem:[#allocation3 + $0x4] ss:$8 sps:$4 sm:$0xff]   ;;  %v537_v27 = vld [vmem:[#allocation3] ss:$8 sps:$4 sm:$0xff]   ;;  %v538_v28 = vld [vmem:[#allocation3 + $0xf4] ss:$8 sps:$4 sm:$0xff]  }
  0x19   :  { %393 = vmatpush1.bf16.msra.mxu0 %v519_v13  ;;  %v540_v29 = vld [vmem:[#allocation3 + $0xf0] ss:$8 sps:$4 sm:$0xff]   ;;  %v541_v30 = vld [vmem:[#allocation3 + $0xe4] ss:$8 sps:$4 sm:$0xff]   ;;  %v543_v31 = vld [vmem:[#allocation3 + $0xe0] ss:$8 sps:$4 sm:$0xff]  }
  0x1a   :  { %394 = vmatprep.subr.bf16.mxu0 %v520_v14  ;;  %v544_v32 = vld [vmem:[#allocation3 + $0xd4] ss:$8 sps:$4 sm:$0xff]   ;;  %v546_v33 = vld [vmem:[#allocation3 + $0xd0] ss:$8 sps:$4 sm:$0xff]   ;;  %v547_v34 = vld [vmem:[#allocation3 + $0xc4] ss:$8 sps:$4 sm:$0xff]  }
  0x1b   :  { %v549_v35 = vld [vmem:[#allocation3 + $0xc0] ss:$8 sps:$4 sm:$0xff]   ;;  %v550_v36 = vld [vmem:[#allocation3 + $0xb4] ss:$8 sps:$4 sm:$0xff]   ;;  %v552_v37 = vld [vmem:[#allocation3 + $0xb0] ss:$8 sps:$4 sm:$0xff]  }
  0x1c   :  { %v553_v38 = vld [vmem:[#allocation3 + $0xa4] ss:$8 sps:$4 sm:$0xff]   ;;  %v555_v39 = vld [vmem:[#allocation3 + $0xa0] ss:$8 sps:$4 sm:$0xff]   ;;  %v556_v40 = vld [vmem:[#allocation3 + $0x94] ss:$8 sps:$4 sm:$0xff]  }
  0x1d   :  { %395 = vmatpush1.bf16.msra.mxu0 %v522_v16  ;;  %v558_v41 = vld [vmem:[#allocation3 + $0x90] ss:$8 sps:$4 sm:$0xff]   ;;  %v559_v42 = vld [vmem:[#allocation3 + $0x84] ss:$8 sps:$4 sm:$0xff]   ;;  %v561_v43 = vld [vmem:[#allocation3 + $0x80] ss:$8 sps:$4 sm:$0xff]  }
  0x1e   :  { %396 = vmatprep.subr.bf16.mxu0 %v523_v18  ;;  %v168_v50 = vld [vmem:[%s675_s4] sm:$0x3] }
  0x1f   :  { %471 = vmatmul.mubr.msk.bf16.vlgmr.msra.gmra.mxu1 %vm123_vm2, %v50_v17  ;;  %v173_v53 = vrot.slane %v168_v50, %v172_v48  ;;  %v177_v56 = vrot.slane %v168_v50, %v176_v51  ;;  %v218_v3 = vld [vmem:[%s677_s6] sm:$0x3] }
  0x20   :  { %v223_v4 = vrot.slane %v218_v3, %v172_v48  ;;  %v227_v5 = vrot.slane %v218_v3, %v176_v51  ;;  %v433_v7 = vld [vmem:[%s678_s7] sm:$0x3] }
  0x21   :  { %397 = vmatpush1.bf16.msra.mxu0 %v525_v19  ;;  %v438_v12 = vrot.slane %v433_v7, %v172_v48  ;;  %v442_v13 = vrot.slane %v433_v7, %v176_v51 }
  0x22   :  { %398 = vmatprep.subr.bf16.mxu0 %v526_v20  ;;  %v504_v20 = vld [vmem:[#allocation2] ss:$0 sm:$0xff] }
  0x25   :  { %399 = vmatpush1.bf16.msra.mxu0 %v528_v21 }
  0x26   :  { %400 = vmatprep.subr.bf16.mxu0 %v529_v22 }
  0x29   :  { %401 = vmatpush1.bf16.msra.mxu0 %v531_v23 }
  0x2a   :  { %402 = vmatprep.subr.bf16.mxu0 %v532_v24 }
  0x2d   :  { %403 = vmatpush1.bf16.msra.mxu0 %v534_v25 }
  0x2e   :  { %404 = vmatprep.subr.bf16.mxu0 %v535_v26 }
  0x31   :  { %405 = vmatpush1.bf16.msra.mxu0 %v537_v27 }
  0x32   :  { %406 = vmatprep.subr.bf16.mxu0 %v538_v28 }
  0x35   :  { %407 = vmatpush2.bf16.msra.mxu0 %v540_v29 }
  0x36   :  { %408 = vmatprep.subr.bf16.mxu0 %v541_v30 }
  0x39   :  { %409 = vmatpush2.bf16.msra.mxu0 %v543_v31 }
  0x3a   :  { %410 = vmatprep.subr.bf16.mxu0 %v544_v32 }
  0x3d   :  { %411 = vmatpush2.bf16.msra.mxu0 %v546_v33 }
  0x3e   :  { %412 = vmatprep.subr.bf16.mxu0 %v547_v34 }
  0x41   :  { %413 = vmatpush2.bf16.msra.mxu0 %v549_v35 }
  0x42   :  { %414 = vmatprep.subr.bf16.mxu0 %v550_v36 }
  0x45   :  { %415 = vmatpush2.bf16.msra.mxu0 %v552_v37 }
  0x46   :  { %416 = vmatprep.subr.bf16.mxu0 %v553_v38 }
  0x49   :  { %417 = vmatpush2.bf16.msra.mxu0 %v555_v39 }
  0x4a   :  { %418 = vmatprep.subr.bf16.mxu0 %v556_v40 }
  0x4d   :  { %419 = vmatpush2.bf16.msra.mxu0 %v558_v41 }
  0x4e   :  { %420 = vmatprep.subr.bf16.mxu0 %v559_v42 }
  0x51   :  { %421 = vmatpush2.bf16.msra.mxu0 %v561_v43 }
  0xd7   :  { %v106_v46 = vpop.f32.mrf.mxu1 }
  0xd9   :  { %v108_v47 = vpop.f32.mrf.mxu1 }
  0xdb   :  { %v110_v49 = vpop.f32.mrf.mxu1 }
  0xdd   :  { %v111_v52 = vpop.f32.mrf.mxu1 }
  0xdf   :  { %v161_v54 = vpop.f32.mrf.mxu1 }
  0xe0   :  { %v162_v55 = vadd.f32 %v161_v54, %v106_v46 }
  0xe1   :  { %v163_v57 = vpop.f32.mrf.mxu1 }
  0xe2   :  { %v180_v58 = vadd.f32 %v173_v53, %v162_v55  ;;  %v164_v59 = vadd.f32 %v163_v57, %v108_v47 }
  0xe3   :  { %v165_v60 = vpop.f32.mrf.mxu1 }
  0xe4   :  { %v181_v61 = vadd.f32 %v177_v56, %v164_v59  ;;  %v182_v62 = vmax.f32 %v180_v58, 0.0 }
  0xe5   :  { %v166_v63 = vpop.f32.mrf.mxu1 }
  0xe6   :  { %v183_v0 = vmax.f32 %v181_v61, 0.0  ;;  %v184_v2 = vpack.c.bf16 %v182_v62, %v182_v62 }
  0xe8   :  { %v185_v1 = vpack.c.bf16 %v183_v0, %v183_v0 }
  0xea   :  { %422 = vmatprep.mubr.bf16.mxu0 %v185_v1 }
  0xeb   :  { %423 = vmatmul.mubr.bf16.vlgmr.msra.gmra.mxu0 %v184_v2 }
 0x1ab   :  { %v424_v6 = vpop.f32.mrf.mxu0 }
 0x1ac   :  { %v425_v8 = vadd.f32 %v424_v6, %v223_v4 }
 0x1ad   :  { %v426_v9 = vpop.f32.mrf.mxu0 }
 0x1ae   :  { %v431_v10 = vmax.f32 %v425_v8, 0.0  ;;  %v427_v11 = vadd.f32 %v426_v9, %v227_v5 }
 0x1af   :  { %v428_v14 = vpop.f32.mrf.mxu0 }
 0x1b0   :  { %v432_v15 = vmax.f32 %v427_v11, 0.0  ;;  %v445_v17 = vmul.f32 %v438_v12, %v431_v10 }
 0x1b1   :  { %v429_v16 = vpop.f32.mrf.mxu0 }
 0x1b2   :  { %v446_v18 = vmul.f32 %v442_v13, %v432_v15 }
 0x1b4   :  { %v447_v19 = vadd.f32 %v446_v18, %v445_v17 }
 0x1b6   :  { %448 = vadd.xlane.f32.xlu0 %v447_v19 }
 0x23f   :  { %v449_v21 = vpop.xlane.xlu0 %448 }
 0x240   :  { %v457_v22 = vadd.f32 %v504_v20, %v449_v21 }
 0x242   :  { %459 = vst.msk [vmem:[%s680_s9] sm:$0xff] %vm458_vm3, %v457_v22 }
 0x243   :  { %464 = vsyncpa [#allocation4], 1 }

</bundles_post_ra>
